<compile_context>
chip_gen: v7x
topology: tpu7x:2x2x1
jax: 0.10.0
libtpu: 0.0.40
codegen_flags: <defaults>
</compile_context>

<pallas_src>
import math

import jax
import jax.numpy as jnp
from jax.experimental import pallas as pl
from jax.experimental.pallas import tpu as pltpu

N_DIM = 300
LANE = 128


def _round_up(n, m):
    return ((n + m - 1) // m) * m


def _mlp_kernel(x_ref, w1_ref, b1_ref, w2_ref, b2_ref, w3_ref, b3_ref, o_ref):
    # x_ref: (TB, IN_pad) bf16 batch tile; weights bf16, biases f32 (resident).
    x = x_ref[...]

    # fc1 + ReLU (dropout is identity in eval mode)
    h1 = jnp.dot(x, w1_ref[...], preferred_element_type=jnp.float32) + b1_ref[...]
    h1 = jnp.maximum(h1, 0.0).astype(jnp.bfloat16)

    # fc2 + ReLU
    h2 = jnp.dot(h1, w2_ref[...], preferred_element_type=jnp.float32) + b2_ref[...]
    h2 = jnp.maximum(h2, 0.0).astype(jnp.bfloat16)

    # fcfinal + sigmoid (exp and approx reciprocal both go to the EUP slot)
    logits = jnp.dot(h2, w3_ref[...], preferred_element_type=jnp.float32) + b3_ref[...]
    o_ref[...] = pl.reciprocal(1.0 + jnp.exp(-logits), approx=True).astype(o_ref.dtype)


def init_params(key, input_size, output_size):
    """Raw f32 params matching nn.Linear's U(-1/sqrt(fan_in), 1/sqrt(fan_in)).

    Weights are stored as [in, out] (PyTorch weight.T), so y = x @ W + b.
    """
    keys = jax.random.split(key, 6)

    def linear(kw, kb, fan_in, fan_out):
        bound = 1.0 / math.sqrt(fan_in)
        w = jax.random.uniform(kw, (fan_in, fan_out), jnp.float32, -bound, bound)
        b = jax.random.uniform(kb, (1, fan_out), jnp.float32, -bound, bound)
        return w, b

    w1, b1 = linear(keys[0], keys[1], input_size, N_DIM)
    w2, b2 = linear(keys[2], keys[3], N_DIM, N_DIM)
    w3, b3 = linear(keys[4], keys[5], N_DIM, output_size)
    return {"w1": w1, "b1": b1, "w2": w2, "b2": b2, "w3": w3, "b3": b3}


def prepare_params(params, input_size, output_size):
    """Zero-pad every dim to a multiple of 128 and cast weights to bf16.

    Padded hidden units get zero weight & bias, so ReLU leaves them at 0 and
    they contribute nothing downstream; padded output lanes are sliced off in
    the wrapper.
    """
    in_p = _round_up(input_size, LANE)
    hid_p = _round_up(N_DIM, LANE)
    out_p = _round_up(output_size, LANE)

    def pad2(a, rows, cols, dtype):
        return jnp.pad(a, ((0, rows - a.shape[0]), (0, cols - a.shape[1]))).astype(dtype)

    return {
        "w1": pad2(params["w1"], in_p, hid_p, jnp.bfloat16),
        "b1": pad2(params["b1"], 1, hid_p, jnp.float32),
        "w2": pad2(params["w2"], hid_p, hid_p, jnp.bfloat16),
        "b2": pad2(params["b2"], 1, hid_p, jnp.float32),
        "w3": pad2(params["w3"], hid_p, out_p, jnp.bfloat16),
        "b3": pad2(params["b3"], 1, out_p, jnp.float32),
        "input_size": input_size,
        "output_size": output_size,
    }


def mlp_classifier_forward(x, prepared, *, batch_tile=256):
    """x: [B, input_size] float32/bfloat16. Returns [B, output_size] float32."""
    B, in_size = x.shape
    in_p = prepared["w1"].shape[0]
    out_p = prepared["w3"].shape[1]
    out_size = prepared["output_size"]
    assert in_size == prepared["input_size"]

    # Batch tile: 256 for MXU saturation on v6e/v7x, shrink (multiple of 8)
    # for tiny batches so we don't pad 8 rows up to 256.
    tb = min(batch_tile, _round_up(B, 8))
    b_pad = _round_up(B, tb)

    xp = jnp.pad(x.astype(jnp.bfloat16), ((0, b_pad - B), (0, in_p - in_size)))

    w1, b1 = prepared["w1"], prepared["b1"]
    w2, b2 = prepared["w2"], prepared["b2"]
    w3, b3 = prepared["w3"], prepared["b3"]

    # Constant block index -> the whole weight stays VMEM-resident across the
    # batch loop (DMA'd once, never refetched).
    resident = lambda shape: pl.BlockSpec(shape, lambda i: (0,) * len(shape))

    out_padded = pl.pallas_call(
        _mlp_kernel,
        out_shape=jax.ShapeDtypeStruct((b_pad, out_p), jnp.float32),
        grid=(b_pad // tb,),
        in_specs=[
            pl.BlockSpec((tb, in_p), lambda i: (i, 0)),
            resident(w1.shape), resident(b1.shape),
            resident(w2.shape), resident(b2.shape),
            resident(w3.shape), resident(b3.shape),
        ],
        out_specs=pl.BlockSpec((tb, out_p), lambda i: (i, 0)),
        compiler_params=pltpu.CompilerParams(
            dimension_semantics=("parallel",),  # megacore sharding on v7x
        ),
    )(xp, w1, b1, w2, b2, w3, b3)

    return out_padded[:B, :out_size]


if __name__ == "__main__":
    key = jax.random.PRNGKey(0)
    k_x, k_p = jax.random.split(key)

    batch, input_size, output_size = 8, 64, 10
    x = jax.random.normal(k_x, (batch, input_size), jnp.float32)

    raw_params = init_params(k_p, input_size, output_size)
    prepared = prepare_params(raw_params, input_size, output_size)

    out = mlp_classifier_forward(x, prepared)
    out = jax.block_until_ready(out)

    # Pure-JAX reference with the same bf16 quantization + f32 accumulation.
    xb = jnp.pad(
        x.astype(jnp.bfloat16),
        ((0, 0), (0, prepared["w1"].shape[0] - input_size)),
    )
    h1 = jnp.maximum(
        jnp.dot(xb, prepared["w1"], preferred_element_type=jnp.float32)
        + prepared["b1"], 0.0).astype(jnp.bfloat16)
    h2 = jnp.maximum(
        jnp.dot(h1, prepared["w2"], preferred_element_type=jnp.float32)
        + prepared["b2"], 0.0).astype(jnp.bfloat16)
    logits = (jnp.dot(h2, prepared["w3"], preferred_element_type=jnp.float32)
              + prepared["b3"])
    ref = (1.0 / (1.0 + jnp.exp(-logits)))[:, :output_size]

    assert out.shape == (batch, output_size)
    # Tolerance covers the EUP approximate-reciprocal in the kernel's sigmoid.
    assert jnp.allclose(out, ref, atol=5e-3, rtol=0), (
        float(jnp.max(jnp.abs(out - ref))))

    print("KERNEL_OK")
</pallas_src>

<mosaic_0001>
module attributes {stable_mosaic.version = 11 : i64} {
  func.func @_mlp_kernel(%arg0: i32, %arg1: memref<8x128xbf16, #tpu.memory_space<vmem>>, %arg2: memref<128x384xbf16, #tpu.memory_space<vmem>>, %arg3: memref<1x384xf32, #tpu.memory_space<vmem>>, %arg4: memref<384x384xbf16, #tpu.memory_space<vmem>>, %arg5: memref<1x384xf32, #tpu.memory_space<vmem>>, %arg6: memref<384x128xbf16, #tpu.memory_space<vmem>>, %arg7: memref<1x128xf32, #tpu.memory_space<vmem>>, %arg8: memref<8x128xf32, #tpu.memory_space<vmem>>) attributes {dimension_semantics = [#tpu.dimension_semantics<parallel>], iteration_bounds = array<i64: 1>, scalar_prefetch = 0 : i64, scratch_operands = 0 : i64, tpu.core_type = #tpu.core_type<tc>, window_params = [{transform_indices = @transform_0, window_bounds = array<i64: 8, 128>}, {pipeline_mode = #tpu.pipeline_mode<synchronous>, transform_indices = @transform_1, window_bounds = array<i64: 128, 384>}, {pipeline_mode = #tpu.pipeline_mode<synchronous>, transform_indices = @transform_2, window_bounds = array<i64: 1, 384>}, {pipeline_mode = #tpu.pipeline_mode<synchronous>, transform_indices = @transform_3, window_bounds = array<i64: 384, 384>}, {pipeline_mode = #tpu.pipeline_mode<synchronous>, transform_indices = @transform_4, window_bounds = array<i64: 1, 384>}, {pipeline_mode = #tpu.pipeline_mode<synchronous>, transform_indices = @transform_5, window_bounds = array<i64: 384, 128>}, {pipeline_mode = #tpu.pipeline_mode<synchronous>, transform_indices = @transform_6, window_bounds = array<i64: 1, 128>}, {transform_indices = @transform_7, window_bounds = array<i64: 8, 128>}]} {
    %c0 = arith.constant 0 : index
    %c0_0 = arith.constant 0 : index
    %0 = vector.load %arg1[%c0, %c0_0] : memref<8x128xbf16, #tpu.memory_space<vmem>>, vector<8x128xbf16>
    %c0_1 = arith.constant 0 : index
    %c0_2 = arith.constant 0 : index
    %1 = vector.load %arg2[%c0_1, %c0_2] : memref<128x384xbf16, #tpu.memory_space<vmem>>, vector<128x384xbf16>
    %cst = arith.constant dense<0.000000e+00> : vector<8x384xf32>
    %2 = tpu.matmul %0, %1, %cst {dimension_numbers = #tpu.dot_dimension_numbers<[1], [0], [0], [1], [0, 0, 1, 1], [], []>} : vector<8x128xbf16>, vector<128x384xbf16>, vector<8x384xf32> -> vector<8x384xf32>
    %c0_3 = arith.constant 0 : index
    %c0_4 = arith.constant 0 : index
    %3 = vector.load %arg3[%c0_3, %c0_4] : memref<1x384xf32, #tpu.memory_space<vmem>>, vector<1x384xf32>
    %4 = vector.broadcast %3 : vector<1x384xf32> to vector<8x384xf32>
    %5 = arith.addf %2, %4 : vector<8x384xf32>
    %cst_5 = arith.constant 0.000000e+00 : f32
    %6 = vector.broadcast %cst_5 : f32 to vector<8x384xf32>
    %7 = arith.maximumf %5, %6 : vector<8x384xf32>
    %8 = arith.truncf %7 : vector<8x384xf32> to vector<8x384xbf16>
    %c0_6 = arith.constant 0 : index
    %c0_7 = arith.constant 0 : index
    %9 = vector.load %arg4[%c0_6, %c0_7] : memref<384x384xbf16, #tpu.memory_space<vmem>>, vector<384x384xbf16>
    %cst_8 = arith.constant dense<0.000000e+00> : vector<8x384xf32>
    %10 = tpu.matmul %8, %9, %cst_8 {dimension_numbers = #tpu.dot_dimension_numbers<[1], [0], [0], [1], [0, 0, 1, 1], [], []>} : vector<8x384xbf16>, vector<384x384xbf16>, vector<8x384xf32> -> vector<8x384xf32>
    %c0_9 = arith.constant 0 : index
    %c0_10 = arith.constant 0 : index
    %11 = vector.load %arg5[%c0_9, %c0_10] : memref<1x384xf32, #tpu.memory_space<vmem>>, vector<1x384xf32>
    %12 = vector.broadcast %11 : vector<1x384xf32> to vector<8x384xf32>
    %13 = arith.addf %10, %12 : vector<8x384xf32>
    %cst_11 = arith.constant 0.000000e+00 : f32
    %14 = vector.broadcast %cst_11 : f32 to vector<8x384xf32>
    %15 = arith.maximumf %13, %14 : vector<8x384xf32>
    %16 = arith.truncf %15 : vector<8x384xf32> to vector<8x384xbf16>
    %c0_12 = arith.constant 0 : index
    %c0_13 = arith.constant 0 : index
    %17 = vector.load %arg6[%c0_12, %c0_13] : memref<384x128xbf16, #tpu.memory_space<vmem>>, vector<384x128xbf16>
    %cst_14 = arith.constant dense<0.000000e+00> : vector<8x128xf32>
    %18 = tpu.matmul %16, %17, %cst_14 {dimension_numbers = #tpu.dot_dimension_numbers<[1], [0], [0], [1], [0, 0, 1, 1], [], []>} : vector<8x384xbf16>, vector<384x128xbf16>, vector<8x128xf32> -> vector<8x128xf32>
    %c0_15 = arith.constant 0 : index
    %c0_16 = arith.constant 0 : index
    %19 = vector.load %arg7[%c0_15, %c0_16] : memref<1x128xf32, #tpu.memory_space<vmem>>, vector<1x128xf32>
    %20 = vector.broadcast %19 : vector<1x128xf32> to vector<8x128xf32>
    %21 = arith.addf %18, %20 : vector<8x128xf32>
    %cst_17 = arith.constant 0.000000e+00 : f32
    %22 = vector.broadcast %cst_17 : f32 to vector<8x128xf32>
    %23 = arith.subf %22, %21 : vector<8x128xf32>
    %24 = math.exp %23 : vector<8x128xf32>
    %cst_18 = arith.constant 1.000000e+00 : f32
    %25 = vector.broadcast %cst_18 : f32 to vector<8x128xf32>
    %26 = arith.addf %25, %24 : vector<8x128xf32>
    %27 = tpu.reciprocal %26 {approx = true} : vector<8x128xf32> -> vector<8x128xf32>
    %c0_19 = arith.constant 0 : index
    %c0_20 = arith.constant 0 : index
    %28 = vector.load %arg8[%c0_19, %c0_20] : memref<8x128xf32, #tpu.memory_space<vmem>>, vector<8x128xf32>
    tpu.vector_store %arg8[%c0_19, %c0_20], %27 {strides = array<i32>} : memref<8x128xf32, #tpu.memory_space<vmem>>, vector<8x128xf32>,
    return
  }
  func.func @transform_0(%arg0: i32) -> (i32, i32) {
    %c0_i32 = arith.constant 0 : i32
    %c0_i32_0 = arith.constant 0 : i32
    return %arg0, %c0_i32 : i32, i32
  }
  func.func @transform_1(%arg0: i32) -> (i32, i32) {
    %c0_i32 = arith.constant 0 : i32
    %c0_i32_0 = arith.constant 0 : i32
    %c0_i32_1 = arith.constant 0 : i32
    return %c0_i32, %c0_i32_0 : i32, i32
  }
  func.func @transform_2(%arg0: i32) -> (i32, i32) {
    %c0_i32 = arith.constant 0 : i32
    %c0_i32_0 = arith.constant 0 : i32
    %c0_i32_1 = arith.constant 0 : i32
    return %c0_i32, %c0_i32_0 : i32, i32
  }
  func.func @transform_3(%arg0: i32) -> (i32, i32) {
    %c0_i32 = arith.constant 0 : i32
    %c0_i32_0 = arith.constant 0 : i32
    %c0_i32_1 = arith.constant 0 : i32
    return %c0_i32, %c0_i32_0 : i32, i32
  }
  func.func @transform_4(%arg0: i32) -> (i32, i32) {
    %c0_i32 = arith.constant 0 : i32
    %c0_i32_0 = arith.constant 0 : i32
    %c0_i32_1 = arith.constant 0 : i32
    return %c0_i32, %c0_i32_0 : i32, i32
  }
  func.func @transform_5(%arg0: i32) -> (i32, i32) {
    %c0_i32 = arith.constant 0 : i32
    %c0_i32_0 = arith.constant 0 : i32
    %c0_i32_1 = arith.constant 0 : i32
    return %c0_i32, %c0_i32_0 : i32, i32
  }
  func.func @transform_6(%arg0: i32) -> (i32, i32) {
    %c0_i32 = arith.constant 0 : i32
    %c0_i32_0 = arith.constant 0 : i32
    %c0_i32_1 = arith.constant 0 : i32
    return %c0_i32, %c0_i32_0 : i32, i32
  }
  func.func @transform_7(%arg0: i32) -> (i32, i32) {
    %c0_i32 = arith.constant 0 : i32
    %c0_i32_0 = arith.constant 0 : i32
    return %arg0, %c0_i32 : i32, i32
  }
}

</mosaic_0001>

<bundles_post_ra>
// kernel: tpu_custom_call.1
= control target key start
LH: loop header
LB: loop body
LE: loop exit
PB: predicated region body
PF: predicated region fallthrough
CT: control target
= control target key end

     0   :  { %12 = vsyncpa [#allocation3], 0  ;;  %s2033_s0 = inlined_call_operand.hbm [shape: bf16[8,128], index: 0, kind: input, shape index: {}]   ;;  %s2034_s1 = inlined_call_operand.hbm [shape: bf16[128,384], index: 1, kind: input, shape index: {}]   ;;  %s2035_s2 = inlined_call_operand.vmem [shape: f32[1,384], index: 2, kind: input, shape index: {}]   ;;  %s2036_s3 = inlined_call_operand.hbm [shape: bf16[384,384], index: 3, kind: input, shape index: {}]   ;;  %s2037_s4 = inlined_call_operand.vmem [shape: f32[1,384], index: 4, kind: input, shape index: {}]   ;;  %s2038_s5 = inlined_call_operand.hbm [shape: bf16[384,128], index: 5, kind: input, shape index: {}]   ;;  %s2039_s6 = inlined_call_operand.vmem [shape: f32[1,128], index: 6, kind: input, shape index: {}]   ;;  %s2040_s7 = inlined_call_operand.hbm [shape: f32[8,128], index: 7, kind: output, shape index: {}]  }
   0x1   :  { %13 = vsyncpa [#allocation6], 0 }
   0x2   :  { %14 = vsyncpa [#allocation9], 0 }
   0x3   :  { %15 = vsyncpa [#allocation4], 0  ;;  %s1857_s24 = smov [#allocation5]   ;;  %s1739_s28 = scalar_lea.hbm %s2034_s1, 3072 }
   0x4   :  { %s31_s25 = sshll.u32 %s1857_s24, 4  ;;  %p1740_p0 = scmp.ne.s32.totalorder %s2034_s1, %s1739_s28  ;;  %s32_s25 = int_to_ptr.vmem [resolvable:$true] %s31_s25 }
   0x5   :  { %p1743_p1 = scmp.lt.u32.totalorder %s1739_s28, %s2034_s1 }
   0x7   :  { %p1745_p2 = pnand %p1743_p1, %p1740_p0 }
   0x9   :  { %1748 = shalt.err (!%p1745_p2)
}
   0xa   :  { %s1749_s10 = scalar_lea.vmem %s32_s25, 3072  ;;  %p1754_p4 = scmp.lt.s32.totalorder %s32_s25, %s32_s25 }
   0xb   :  { %p1750_p3 = scmp.ne.s32.totalorder %s32_s25, %s1749_s10  ;;  %p1755_p5 = scmp.lt.s32.totalorder %s1749_s10, %s1749_s10 }
   0xd   :  { %p1756_p6 = por %p1755_p5, %p1754_p4 }
   0xf   :  { %p1757_p7 = pnand %p1756_p6, %p1750_p3 }
  0x11   :  { %1760 = shalt.err (!%p1757_p7)
}
  0x12   :  { %s1858_s11 = smov 192   ;;  %s1859_s12 = smov 12  }
  0x13   :  { %37 = dma.hbm_to_vmem [thread:$0]  %s2034_s1, 3072, %s32_s25, [#allocation6], %s1858_s11, %s1858_s11, %s1859_s12  }
  0x14   :  { %s1860_s15 = smov [#allocation2]   ;;  %s1861_s17 = smov [#allocation7]  }
  0x15   :  { %s22_s16 = sshll.u32 %s1860_s15, 4  ;;  %s45_s18 = sshll.u32 %s1861_s17, 4  ;;  %s23_s16 = int_to_ptr.vmem [resolvable:$true] %s22_s16  ;;  %s46_s18 = int_to_ptr.vmem [resolvable:$true] %s45_s18 }
  0x16   :  { %s1761_s21 = scalar_lea.hbm %s2033_s0, 64 }
  0x17   :  { %p1762_p8 = scmp.ne.s32.totalorder %s2033_s0, %s1761_s21  ;;  %p1765_p9 = scmp.lt.u32.totalorder %s1761_s21, %s2033_s0 }
  0x19   :  { %p1767_p10 = pnand %p1765_p9, %p1762_p8 }
  0x1b   :  { %1770 = shalt.err (!%p1767_p10)
}
  0x1c   :  { %s1771_s1 = scalar_lea.vmem %s23_s16, 64  ;;  %p1776_p12 = scmp.lt.s32.totalorder %s23_s16, %s23_s16 }
  0x1d   :  { %p1772_p11 = scmp.ne.s32.totalorder %s23_s16, %s1771_s1  ;;  %p1777_p13 = scmp.lt.s32.totalorder %s1771_s1, %s1771_s1 }
  0x1f   :  { %p1778_p0 = por %p1777_p13, %p1776_p12 }
  0x21   :  { %p1779_p1 = pnand %p1778_p0, %p1772_p11 }
  0x23   :  { %1782 = shalt.err (!%p1779_p1)
}
  0x24   :  { %25 = dma.hbm_to_vmem [thread:$0]  %s2033_s0, 64, %s23_s16, [#allocation3]  }
  0x25   :  { %s1783_s30 = scalar_lea.hbm %s2036_s3, 9216 }
  0x26   :  { %p1784_p2 = scmp.ne.s32.totalorder %s2036_s3, %s1783_s30  ;;  %p1787_p3 = scmp.lt.u32.totalorder %s1783_s30, %s2036_s3 }
  0x28   :  { %p1789_p4 = pnand %p1787_p3, %p1784_p2 }
  0x2a   :  { %1792 = shalt.err (!%p1789_p4)
}
  0x2b   :  { %s1793_s14 = scalar_lea.vmem %s46_s18, 9216  ;;  %p1798_p6 = scmp.lt.s32.totalorder %s46_s18, %s46_s18 }
  0x2c   :  { %p1794_p5 = scmp.ne.s32.totalorder %s46_s18, %s1793_s14  ;;  %p1799_p7 = scmp.lt.s32.totalorder %s1793_s14, %s1793_s14 }
  0x2e   :  { %p1800_p8 = por %p1799_p7, %p1798_p6 }
  0x30   :  { %p1801_p9 = pnand %p1800_p8, %p1794_p5 }
  0x32   :  { %1804 = shalt.err (!%p1801_p9)
}
  0x33   :  { %51 = dma.hbm_to_vmem [thread:$0]  %s2036_s3, 9216, %s46_s18, [#allocation6], %s1858_s11, %s1858_s11, %s1859_s12  }
  0x34   :  { %s1862_s16 = smov [#allocation8]   ;;  %s1805_s21 = scalar_lea.hbm %s2038_s5, 3072 }
  0x35   :  { %s59_s17 = sshll.u32 %s1862_s16, 4  ;;  %p1806_p10 = scmp.ne.s32.totalorder %s2038_s5, %s1805_s21  ;;  %s60_s17 = int_to_ptr.vmem [resolvable:$true] %s59_s17 }
  0x36   :  { %p1809_p11 = scmp.lt.u32.totalorder %s1805_s21, %s2038_s5 }
  0x38   :  { %p1811_p12 = pnand %p1809_p11, %p1806_p10 }
  0x3a   :  { %1814 = shalt.err (!%p1811_p12)
}
  0x3b   :  { %s1815_s1 = scalar_lea.vmem %s60_s17, 3072  ;;  %p1820_p0 = scmp.lt.s32.totalorder %s60_s17, %s60_s17 }
  0x3c   :  { %p1816_p13 = scmp.ne.s32.totalorder %s60_s17, %s1815_s1  ;;  %p1821_p1 = scmp.lt.s32.totalorder %s1815_s1, %s1815_s1 }
  0x3e   :  { %p1822_p2 = por %p1821_p1, %p1820_p0 }
  0x40   :  { %p1823_p3 = pnand %p1822_p2, %p1816_p13 }
  0x42   :  { %1826 = shalt.err (!%p1823_p3)
}
  0x43   :  { %s1863_s3 = smov 64   ;;  %s1864_s11 = smov 4  }
  0x44   :  { %65 = dma.hbm_to_vmem [thread:$0]  %s2038_s5, 3072, %s60_s17, [#allocation9], %s1863_s3, %s1863_s3, %s1864_s11  }
  0x45   :  { %1849 = dma.done.wait [#allocation3], 64  }
  0x46   :  { %1850 = vsyncadd [#allocation3], 4294967232 }
  0x47   :  { %1851 = dma.done.wait [#allocation6], 12288  }
  0x48   :  { %1852 = vsyncadd [#allocation6], 4294955008 }
  0x49   :  { %1853 = dma.done.wait [#allocation9], 3072  }
  0x4a   :  { %1854 = vsyncadd [#allocation9], 4294964224  ;;  %v1865_v0 = vmov 0.0   ;;  %v1866_v1 = vmov 0   ;;  %vm1867_vm0 = vmmov 0   ;;  %s1868_s29 = smov [#allocation10]  }
  0x4b   :  { %1505 = vmatprep.subr.bf16.mxu1 %v1865_v0  ;;  %291 = vmatprep.mubr.bf16.mxu0 %v1866_v1  ;;  %v1583_v2 = vld [vmem:[#allocation5 + $0x4] ss:$12 sps:$4 sm:$0xff]   ;;  %v1585_v3 = vld [vmem:[#allocation5] ss:$12 sps:$4 sm:$0xff]   ;;  %v1586_v4 = vld [vmem:[#allocation5 + $0x1c] ss:$12 sps:$4 sm:$0xff]  }
  0x4c   :  { %1521 = vmatprep.mubr.msk.bf16.mxu1 %vm1867_vm0, %v1865_v0  ;;  %259 = vmatprep.subr.bf16.mxu0 %v1583_v2  ;;  %v1588_v5 = vld [vmem:[#allocation5 + $0x18] ss:$12 sps:$4 sm:$0xff]   ;;  %v1589_v6 = vld [vmem:[#allocation5 + $0x34] ss:$12 sps:$4 sm:$0xff]   ;;  %v1591_v7 = vld [vmem:[#allocation5 + $0x30] ss:$12 sps:$4 sm:$0xff]  }
  0x4d   :  { %260 = vmatpush1.bf16.msra.mxu0 %v1585_v3  ;;  %v1592_v8 = vld [vmem:[#allocation5 + $0x4c] ss:$12 sps:$4 sm:$0xff]   ;;  %v1594_v9 = vld [vmem:[#allocation5 + $0x48] ss:$12 sps:$4 sm:$0xff]   ;;  %v1595_v11 = vld [vmem:[#allocation5 + $0x64] ss:$12 sps:$4 sm:$0xff]  }
  0x4e   :  { %261 = vmatprep.subr.bf16.mxu0 %v1586_v4  ;;  %v1607_v10 = vld [vmem:[#allocation5 + $0x8] ss:$12 sps:$4 sm:$0xff]   ;;  %v1608_v12 = vld [vmem:[#allocation5 + $0x20] ss:$12 sps:$4 sm:$0xff]   ;;  %v1609_v15 = vld [vmem:[#allocation5 + $0x38] ss:$12 sps:$4 sm:$0xff]  }
  0x4f   :  { %1506 = vmatpush3.bf16.msra.mxu1 %v1607_v10  ;;  %v1597_v13 = vld [vmem:[#allocation5 + $0x60] ss:$12 sps:$4 sm:$0xff]   ;;  %v1598_v14 = vld [vmem:[#allocation5 + $0x7c] ss:$12 sps:$4 sm:$0xff]   ;;  %v1600_v16 = vld [vmem:[#allocation5 + $0x78] ss:$12 sps:$4 sm:$0xff]  }
  0x50   :  { %1507 = vmatprep.subr.bf16.mxu1 %v1865_v0  ;;  %v1601_v17 = vld [vmem:[#allocation5 + $0x94] ss:$12 sps:$4 sm:$0xff]   ;;  %v1610_v18 = vld [vmem:[#allocation5 + $0x50] ss:$12 sps:$4 sm:$0xff]   ;;  %v1604_v20 = vld [vmem:[#allocation5 + $0xac] ss:$12 sps:$4 sm:$0xff]  }
  0x51   :  { %262 = vmatpush1.bf16.msra.mxu0 %v1588_v5  ;;  %v1603_v19 = vld [vmem:[#allocation5 + $0x90] ss:$12 sps:$4 sm:$0xff]   ;;  %v1611_v21 = vld [vmem:[#allocation5 + $0x68] ss:$12 sps:$4 sm:$0xff]   ;;  %v1612_v24 = vld [vmem:[#allocation5 + $0x80] ss:$12 sps:$4 sm:$0xff]  }
  0x52   :  { %263 = vmatprep.subr.bf16.mxu0 %v1589_v6  ;;  %v1606_v22 = vld [vmem:[#allocation5 + $0xa8] ss:$12 sps:$4 sm:$0xff]   ;;  %v1617_v23 = vld [vmem:[#allocation7 + $0x4] ss:$12 sps:$4 sm:$0xff]   ;;  %v81_v25 = vld [vmem:[#allocation2] sm:$0xf] }
  0x53   :  { %1508 = vmatpush3.bf16.msra.mxu1 %v1608_v12  ;;  %v1615_v26 = vld [vmem:[#allocation7] ss:$12 sps:$4 sm:$0xff]   ;;  %v1620_v27 = vld [vmem:[#allocation7 + $0x1c] ss:$12 sps:$4 sm:$0xff]   ;;  %v1613_v28 = vld [vmem:[#allocation5 + $0x98] ss:$12 sps:$4 sm:$0xff]  }
  0x54   :  { %1509 = vmatprep.subr.bf16.mxu1 %v1865_v0  ;;  %v1618_v29 = vld [vmem:[#allocation7 + $0x18] ss:$12 sps:$4 sm:$0xff]   ;;  %v1623_v30 = vld [vmem:[#allocation7 + $0x34] ss:$12 sps:$4 sm:$0xff]   ;;  %v1614_v31 = vld [vmem:[#allocation5 + $0xb0] ss:$12 sps:$4 sm:$0xff]  }
  0x55   :  { %264 = vmatpush1.bf16.msra.mxu0 %v1591_v7  ;;  %v1642_v32 = vld [vmem:[#allocation7 + $0xc8] ss:$12 sps:$4 sm:$0xff]   ;;  %v1621_v33 = vld [vmem:[#allocation7 + $0x30] ss:$12 sps:$4 sm:$0xff]   ;;  %v1626_v34 = vld [vmem:[#allocation7 + $0x4c] ss:$12 sps:$4 sm:$0xff]  }
  0x56   :  { %265 = vmatprep.subr.bf16.mxu0 %v1592_v8  ;;  %v1643_v35 = vld [vmem:[#allocation7 + $0x8] ss:$12 sps:$4 sm:$0xff]   ;;  %v1647_v36 = vld [vmem:[#allocation7 + $0xe0] ss:$12 sps:$4 sm:$0xff]   ;;  %v1629_v38 = vld [vmem:[#allocation7 + $0x64] ss:$12 sps:$4 sm:$0xff]  }
  0x57   :  { %1510 = vmatpush3.bf16.msra.mxu1 %v1609_v15  ;;  %v1624_v37 = vld [vmem:[#allocation7 + $0x48] ss:$12 sps:$4 sm:$0xff]   ;;  %v1648_v39 = vld [vmem:[#allocation7 + $0x20] ss:$12 sps:$4 sm:$0xff]   ;;  %v1652_v40 = vld [vmem:[#allocation7 + $0xf8] ss:$12 sps:$4 sm:$0xff]  }
  0x58   :  { %1511 = vmatprep.subr.bf16.mxu1 %v1865_v0  ;;  %v1627_v41 = vld [vmem:[#allocation7 + $0x60] ss:$12 sps:$4 sm:$0xff]   ;;  %v1632_v42 = vld [vmem:[#allocation7 + $0x7c] ss:$12 sps:$4 sm:$0xff]   ;;  %v1630_v43 = vld [vmem:[#allocation7 + $0x78] ss:$12 sps:$4 sm:$0xff]  }
  0x59   :  { %266 = vmatpush1.bf16.msra.mxu0 %v1594_v9  ;;  %v1653_v44 = vld [vmem:[#allocation7 + $0x38] ss:$12 sps:$4 sm:$0xff]   ;;  %v1657_v45 = vld [vmem:[#allocation7 + $0x110] ss:$12 sps:$4 sm:$0xff]   ;;  %v1635_v46 = vld [vmem:[#allocation7 + $0x94] ss:$12 sps:$4 sm:$0xff]  }
  0x5a   :  { %267 = vmatprep.subr.bf16.mxu0 %v1595_v11  ;;  %v1658_v47 = vld [vmem:[#allocation7 + $0x50] ss:$12 sps:$4 sm:$0xff]   ;;  %v1662_v48 = vld [vmem:[#allocation7 + $0x128] ss:$12 sps:$4 sm:$0xff]   ;;  %v1638_v50 = vld [vmem:[#allocation7 + $0xac] ss:$12 sps:$4 sm:$0xff]  }
  0x5b   :  { %1512 = vmatpush3.bf16.msra.mxu1 %v1610_v18  ;;  %v1633_v49 = vld [vmem:[#allocation7 + $0x90] ss:$12 sps:$4 sm:$0xff]   ;;  %v1663_v51 = vld [vmem:[#allocation7 + $0x68] ss:$12 sps:$4 sm:$0xff]   ;;  %v1667_v52 = vld [vmem:[#allocation7 + $0x140] ss:$12 sps:$4 sm:$0xff]  }
  0x5c   :  { %1513 = vmatprep.subr.bf16.mxu1 %v1865_v0  ;;  %v1636_v53 = vld [vmem:[#allocation7 + $0xa8] ss:$12 sps:$4 sm:$0xff]   ;;  %v1641_v54 = vld [vmem:[#allocation7 + $0xc4] ss:$12 sps:$4 sm:$0xff]   ;;  %v1668_v55 = vld [vmem:[#allocation7 + $0x80] ss:$12 sps:$4 sm:$0xff]  }
  0x5d   :  { %268 = vmatpush1.bf16.msra.mxu0 %v1597_v13  ;;  %v1639_v56 = vld [vmem:[#allocation7 + $0xc0] ss:$12 sps:$4 sm:$0xff]   ;;  %v1646_v57 = vld [vmem:[#allocation7 + $0xdc] ss:$12 sps:$4 sm:$0xff]   ;;  %v1644_v58 = vld [vmem:[#allocation7 + $0xd8] ss:$12 sps:$4 sm:$0xff]  }
  0x5e   :  { %269 = vmatprep.subr.bf16.mxu0 %v1598_v14  ;;  %v1651_v59 = vld [vmem:[#allocation7 + $0xf4] ss:$12 sps:$4 sm:$0xff]   ;;  %v1649_v60 = vld [vmem:[#allocation7 + $0xf0] ss:$12 sps:$4 sm:$0xff]   ;;  %v1656_v61 = vld [vmem:[#allocation7 + $0x10c] ss:$12 sps:$4 sm:$0xff]   ;;  %v116_v14 = vlaneseq }
  0x5f   :  { %1514 = vmatpush3.bf16.msra.mxu1 %v1611_v21  ;;  %v1654_v62 = vld [vmem:[#allocation7 + $0x108] ss:$12 sps:$4 sm:$0xff]   ;;  %v1661_v63 = vld [vmem:[#allocation7 + $0x124] ss:$12 sps:$4 sm:$0xff]   ;;  %v1659_v2 = vld [vmem:[#allocation7 + $0x120] ss:$12 sps:$4 sm:$0xff]  }
  0x60   :  { %1515 = vmatprep.subr.bf16.mxu1 %v1865_v0  ;;  %v1666_v3 = vld [vmem:[#allocation7 + $0x13c] ss:$12 sps:$4 sm:$0xff]   ;;  %v1664_v4 = vld [vmem:[#allocation7 + $0x138] ss:$12 sps:$4 sm:$0xff]   ;;  %v1671_v5 = vld [vmem:[#allocation7 + $0x154] ss:$12 sps:$4 sm:$0xff]  }
  0x61   :  { %270 = vmatpush1.bf16.msra.mxu0 %v1600_v16  ;;  %v1672_v6 = vld [vmem:[#allocation7 + $0x158] ss:$12 sps:$4 sm:$0xff]   ;;  %v1669_v7 = vld [vmem:[#allocation7 + $0x150] ss:$12 sps:$4 sm:$0xff]   ;;  %v1674_v11 = vld [vmem:[#allocation7 + $0x168] ss:$12 sps:$4 sm:$0xff]  }
  0x62   :  { %271 = vmatprep.subr.bf16.mxu0 %v1601_v17  ;;  %v1673_v8 = vld [vmem:[#allocation7 + $0x98] ss:$12 sps:$4 sm:$0xff]   ;;  %v1677_v10 = vld [vmem:[#allocation7 + $0x170] ss:$12 sps:$4 sm:$0xff]   ;;  %v1975_v15 = vshrl.u32 %v116_v14, 7  ;;  %s1302_s30 = sshll.u32 %s1868_s29, 4  ;;  %s1303_s30 = int_to_ptr.vmem [resolvable:$true] %s1302_s30 }
  0x63   :  { %1516 = vmatpush3.bf16.msra.mxu1 %v1612_v24  ;;  %v1676_v9 = vld [vmem:[#allocation7 + $0x16c] ss:$12 sps:$4 sm:$0xff]   ;;  %v1678_v12 = vld [vmem:[#allocation7 + $0xb0] ss:$12 sps:$4 sm:$0xff]   ;;  %v1725_v14 = vld [vmem:[#allocation8 + $0x20] sm:$0xff]   ;;  %s1827_s8 = scalar_lea.vmem %s1303_s30, 128  ;;  %p1832_p5 = scmp.lt.s32.totalorder %s1303_s30, %s1303_s30 }
  0x64   :  { %1517 = vmatprep.subr.bf16.mxu1 %v1865_v0  ;;  %v1681_v13 = vld [vmem:[#allocation7 + $0x184] ss:$12 sps:$4 sm:$0xff]   ;;  %v118_v16 = vsub.s32 0, %v1975_v15  ;;  %v114_v17 = vld [vmem:[%s2035_s2] sm:$0x7]  ;;  %v122_v18 = vsub.s32 1, %v1975_v15  ;;  %p1828_p4 = scmp.ne.s32.totalorder %s1303_s30, %s1827_s8  ;;  %p1833_p6 = scmp.lt.s32.totalorder %s1827_s8, %s1827_s8 }
  0x65   :  { %272 = vmatpush1.bf16.msra.mxu0 %v1603_v19 }
  0x66   :  { %273 = vmatprep.subr.bf16.mxu0 %v1604_v20  ;;  %v119_v19 = vrot.slane %v114_v17, %v118_v16  ;;  %v123_v20 = vrot.slane %v114_v17, %v122_v18  ;;  %p1834_p7 = por %p1833_p6, %p1832_p5 }
  0x67   :  { %1518 = vmatpush3.bf16.msra.mxu1 %v1613_v28 }
  0x68   :  { %1519 = vmatprep.subr.bf16.mxu1 %v1865_v0  ;;  %p1835_p8 = pnand %p1834_p7, %p1828_p4 }
  0x69   :  { %274 = vmatpush1.bf16.msra.mxu0 %v1606_v22 }
  0x6a   :  { %843 = vmatprep.subr.bf16.mxu0 %v1617_v23 }
  0x6b   :  { %1520 = vmatpush3.bf16.msra.mxu1 %v1614_v31  ;;  %v1682_v31 = vld [vmem:[#allocation7 + $0x188] ss:$12 sps:$4 sm:$0xff]  }
  0x6c   :  { %292 = vmatmul.mubr.bf16.vlgmr.msra.gmra.mrb[0].mxu0 %v81_v25  ;;  %1443 = vmatprep.subr.bf16.mxu1 %v1642_v32 }
  0x6d   :  { %844 = vmatpush1.bf16.msra.mxu0 %v1615_v26 }
  0x6e   :  { %845 = vmatprep.subr.bf16.mxu0 %v1620_v27  ;;  %1522 = vmatmul.mubr.bf16.vlgmr.msra.gmra.mrb[0].mxu1 %v81_v25 }
  0x6f   :  { %1444 = vmatpush3.bf16.msra.mxu1 %v1643_v35  ;;  %v1686_v35 = vld [vmem:[#allocation7 + $0x1a0] ss:$12 sps:$4 sm:$0xff]  }
  0x70   :  { %1445 = vmatprep.subr.bf16.mxu1 %v1647_v36 }
  0x71   :  { %846 = vmatpush1.bf16.msra.mxu0 %v1618_v29 }
  0x72   :  { %847 = vmatprep.subr.bf16.mxu0 %v1623_v30  ;;  %v1679_v30 = vld [vmem:[#allocation7 + $0x180] ss:$12 sps:$4 sm:$0xff]  }
  0x73   :  { %1446 = vmatpush3.bf16.msra.mxu1 %v1648_v39 }
  0x74   :  { %1447 = vmatprep.subr.bf16.mxu1 %v1652_v40 }
  0x75   :  { %848 = vmatpush1.bf16.msra.mxu0 %v1621_v33  ;;  %v1685_v33 = vld [vmem:[#allocation7 + $0x19c] ss:$12 sps:$4 sm:$0xff]  }
  0x76   :  { %849 = vmatprep.subr.bf16.mxu0 %v1626_v34  ;;  %v1683_v34 = vld [vmem:[#allocation7 + $0x198] ss:$12 sps:$4 sm:$0xff]  }
  0x77   :  { %1448 = vmatpush3.bf16.msra.mxu1 %v1653_v44  ;;  %v1691_v44 = vld [vmem:[#allocation7 + $0x1c8] ss:$12 sps:$4 sm:$0xff]  }
  0x78   :  { %1449 = vmatprep.subr.bf16.mxu1 %v1657_v45  ;;  %v1694_v45 = vld [vmem:[#allocation7 + $0x1d0] ss:$12 sps:$4 sm:$0xff]  }
  0x79   :  { %850 = vmatpush1.bf16.msra.mxu0 %v1624_v37  ;;  %v1689_v37 = vld [vmem:[#allocation7 + $0x1b4] ss:$12 sps:$4 sm:$0xff]  }
  0x7a   :  { %851 = vmatprep.subr.bf16.mxu0 %v1629_v38 }
  0x7b   :  { %1450 = vmatpush3.bf16.msra.mxu1 %v1658_v47  ;;  %v1695_v47 = vld [vmem:[#allocation7 + $0x1e0] ss:$12 sps:$4 sm:$0xff]  }
  0x7c   :  { %1451 = vmatprep.subr.bf16.mxu1 %v1662_v48  ;;  %v1698_v48 = vld [vmem:[#allocation7 + $0x1e8] ss:$12 sps:$4 sm:$0xff]  }
  0x7d   :  { %852 = vmatpush1.bf16.msra.mxu0 %v1627_v41  ;;  %v1687_v41 = vld [vmem:[#allocation7 + $0x1b0] ss:$12 sps:$4 sm:$0xff]  }
  0x7e   :  { %853 = vmatprep.subr.bf16.mxu0 %v1632_v42  ;;  %v1690_v42 = vld [vmem:[#allocation7 + $0x1b8] ss:$12 sps:$4 sm:$0xff]  }
  0x7f   :  { %1452 = vmatpush3.bf16.msra.mxu1 %v1663_v51  ;;  %v1699_v51 = vld [vmem:[#allocation7 + $0x1f8] ss:$12 sps:$4 sm:$0xff]  }
  0x80   :  { %1453 = vmatprep.subr.bf16.mxu1 %v1667_v52  ;;  %v1702_v52 = vld [vmem:[#allocation7 + $0x200] ss:$12 sps:$4 sm:$0xff]  }
  0x81   :  { %854 = vmatpush1.bf16.msra.mxu0 %v1630_v43  ;;  %v1693_v43 = vld [vmem:[#allocation7 + $0x1cc] ss:$12 sps:$4 sm:$0xff]  }
  0x82   :  { %855 = vmatprep.subr.bf16.mxu0 %v1635_v46  ;;  %v126_v46 = vsub.s32 2, %v1975_v15 }
  0x83   :  { %1454 = vmatpush3.bf16.msra.mxu1 %v1668_v55  ;;  %v1703_v55 = vld [vmem:[#allocation7 + $0x210] ss:$12 sps:$4 sm:$0xff]  }
  0x84   :  { %1455 = vmatprep.subr.bf16.mxu1 %v1672_v6  ;;  %v1718_v6 = vld [vmem:[#allocation8 + $0x50] sm:$0xff]  }
  0x85   :  { %856 = vmatpush1.bf16.msra.mxu0 %v1633_v49  ;;  %v1701_v49 = vld [vmem:[#allocation7 + $0x1fc] ss:$12 sps:$4 sm:$0xff]  }
  0x86   :  { %857 = vmatprep.subr.bf16.mxu0 %v1638_v50  ;;  %v127_v50 = vrot.slane %v114_v17, %v126_v46  ;;  %v1727_v17 = vld [vmem:[#allocation8 + $0x68] sm:$0xff]  }
  0x87   :  { %1456 = vmatpush3.bf16.msra.mxu1 %v1673_v8  ;;  %v1719_v8 = vld [vmem:[#allocation8 + $0x10] sm:$0xff]  }
  0x88   :  { %1457 = vmatprep.subr.bf16.mxu1 %v1677_v10  ;;  %v1720_v10 = vld [vmem:[#allocation8 + $0x98] sm:$0xff]  }
  0x89   :  { %858 = vmatpush1.bf16.msra.mxu0 %v1636_v53  ;;  %v1705_v53 = vld [vmem:[#allocation7 + $0x214] ss:$12 sps:$4 sm:$0xff]  }
  0x8a   :  { %859 = vmatprep.subr.bf16.mxu0 %v1641_v54 }
  0x8b   :  { %1458 = vmatpush3.bf16.msra.mxu1 %v1678_v12  ;;  %v1724_v12 = vld [vmem:[#allocation8 + $0x60] sm:$0xff]  }
  0x8c   :  { %1525 = vmatprep.subr.bf16.mxu1 %v1865_v0 }
  0x8d   :  { %860 = vmatpush1.bf16.msra.mxu0 %v1639_v56  ;;  %v1706_v56 = vld [vmem:[#allocation7 + $0x218] ss:$12 sps:$4 sm:$0xff]  }
  0x8e   :  { %861 = vmatprep.subr.bf16.mxu0 %v1646_v57  ;;  %v1709_v57 = vld [vmem:[#allocation7 + $0x22c] ss:$12 sps:$4 sm:$0xff]  }
  0x91   :  { %862 = vmatpush1.bf16.msra.mxu0 %v1644_v58 }
  0x92   :  { %863 = vmatprep.subr.bf16.mxu0 %v1651_v59  ;;  %v1707_v59 = vld [vmem:[#allocation7 + $0x228] ss:$12 sps:$4 sm:$0xff]  }
  0x95   :  { %864 = vmatpush1.bf16.msra.mxu0 %v1649_v60  ;;  %v1710_v60 = vld [vmem:[#allocation7 + $0x230] ss:$12 sps:$4 sm:$0xff]  }
  0x96   :  { %865 = vmatprep.subr.bf16.mxu0 %v1656_v61 }
  0x99   :  { %866 = vmatpush1.bf16.msra.mxu0 %v1654_v62  ;;  %v1711_v62 = vld [vmem:[#allocation8 + $0x80] sm:$0xff]  }
  0x9a   :  { %867 = vmatprep.subr.bf16.mxu0 %v1661_v63  ;;  %v1712_v63 = vld [vmem:[#allocation8 + $0x40] sm:$0xff]  }
  0x9d   :  { %868 = vmatpush1.bf16.msra.mxu0 %v1659_v2  ;;  %v1713_v2 = vld [vmem:[#allocation8] sm:$0xff]  }
  0x9e   :  { %869 = vmatprep.subr.bf16.mxu0 %v1666_v3  ;;  %v1715_v3 = vld [vmem:[#allocation8 + $0x48] sm:$0xff]  }
  0xa1   :  { %870 = vmatpush1.bf16.msra.mxu0 %v1664_v4  ;;  %v1714_v4 = vld [vmem:[#allocation8 + $0x88] sm:$0xff]  }
  0xa2   :  { %871 = vmatprep.subr.bf16.mxu0 %v1671_v5  ;;  %v1716_v5 = vld [vmem:[#allocation8 + $0x8] sm:$0xff]  }
  0xa5   :  { %872 = vmatpush1.bf16.msra.mxu0 %v1669_v7  ;;  %v1717_v7 = vld [vmem:[#allocation8 + $0x90] sm:$0xff]  }
  0xa6   :  { %873 = vmatprep.subr.bf16.mxu0 %v1676_v9  ;;  %v1721_v9 = vld [vmem:[#allocation8 + $0x58] sm:$0xff]  }
  0xa9   :  { %874 = vmatpush1.bf16.msra.mxu0 %v1674_v11  ;;  %v1722_v11 = vld [vmem:[#allocation8 + $0x18] sm:$0xff]  }
  0xaa   :  { %884 = vmatprep.subr.bf16.mxu0 %v1681_v13  ;;  %v1723_v13 = vld [vmem:[#allocation8 + $0xa0] sm:$0xff]  }
 0x13f   :  { %v293_v21 = vpop.f32.mrb[0].mxu0 }
 0x140   :  { %v294_v22 = vadd.f32 %v293_v21, %v119_v19  ;;  %v295_v23 = vpop.f32.mrb[1].mxu0  ;;  %v1726_v19 = vld [vmem:[#allocation8 + $0xa8] sm:$0xff]   ;;  %v1729_v21 = vld [vmem:[#allocation8 + $0xb0] sm:$0xff]  }
 0x141   :  { %v296_v24 = vadd.f32 %v295_v23, %v123_v20  ;;  %v297_v25 = vpop.f32.mrb[2].mxu0  ;;  %v334_v36 = vpop.f32.mrb[0].mxu1  ;;  %v1728_v20 = vld [vmem:[#allocation8 + $0x28] sm:$0xff]   ;;  %v1731_v23 = vld [vmem:[#allocation8 + $0x30] sm:$0xff]  }
 0x142   :  { %v340_v26 = vmax.f32 %v294_v22, 0.0  ;;  %v298_v27 = vpop.f32.mrb[3].mxu0  ;;  %v1523_v38 = vpop.f32.mrb[1].mxu1  ;;  %v335_v54 = vadd.f32 %v334_v36, %v127_v50  ;;  %v1730_v22 = vld [vmem:[#allocation8 + $0x70] sm:$0xff]   ;;  %v1733_v25 = vld [vmem:[#allocation8 + $0x78] sm:$0xff]  }
 0x143   :  { %v341_v28 = vmax.f32 %v296_v24, 0.0  ;;  %v337_v39 = vpop.f32.mrb[2].mxu1  ;;  %v1732_v24 = vld [vmem:[#allocation8 + $0xb8] sm:$0xff]  }
 0x144   :  { %v343_v32 = vpack.c.bf16 %v340_v26, %v340_v26  ;;  %v1524_v40 = vpop.f32.mrb[3].mxu1  ;;  %v342_v58 = vmax.f32 %v335_v54, 0.0  ;;  %v1734_v26 = vld [vmem:[#allocation8 + $0x38] sm:$0xff]  }
 0x145   :  { %v344_v29 = vpack.c.bf16 %v341_v28, %v341_v28 }
 0x146   :  { %v345_v61 = vpack.c.bf16 %v342_v58, %v342_v58 }
 0x147   :  { %875 = vmatprep.mubr.bf16.mxu0 %v344_v29  ;;  %957 = vmatprep.mubr.bf16.mxu1 %v344_v29 }
 0x148   :  { %876 = vmatmul.mubr.bf16.vlgmr.msra.gmra.mrb[4].mxu0 %v343_v32  ;;  %958 = vmatmul.mubr.bf16.vlgmr.msra.gmra.mrb[4].mxu1 %v343_v32  ;;  %v442_v32 = vld [vmem:[%s2037_s4] sm:$0x7] }
 0x149   :  { %885 = vmatpush1.bf16.msra.mxu0 %v1679_v30  ;;  %1526 = vmatpush3.bf16.msra.mxu1 %v1682_v31 }
 0x14a   :  { %886 = vmatprep.subr.bf16.mxu0 %v1685_v33  ;;  %1527 = vmatprep.subr.bf16.mxu1 %v1865_v0  ;;  %v455_v33 = vrot.slane %v442_v32, %v126_v46 }
 0x14b   :  { %916 = vmatprep.mubr.bf16.mxu0 %v1866_v1  ;;  %1541 = vmatprep.mubr.msk.bf16.mxu1 %vm1867_vm0, %v1865_v0  ;;  %v1697_v1 = vld [vmem:[#allocation7 + $0x1e4] ss:$12 sps:$4 sm:$0xff]  }
 0x14d   :  { %887 = vmatpush1.bf16.msra.mxu0 %v1683_v34  ;;  %1528 = vmatpush3.bf16.msra.mxu1 %v1686_v35  ;;  %v451_v34 = vrot.slane %v442_v32, %v122_v18 }
 0x14e   :  { %888 = vmatprep.subr.bf16.mxu0 %v1689_v37  ;;  %1529 = vmatprep.subr.bf16.mxu1 %v1865_v0 }
 0x151   :  { %889 = vmatpush1.bf16.msra.mxu0 %v1687_v41  ;;  %1530 = vmatpush3.bf16.msra.mxu1 %v1690_v42 }
 0x152   :  { %890 = vmatprep.subr.bf16.mxu0 %v1693_v43  ;;  %1531 = vmatprep.subr.bf16.mxu1 %v1865_v0 }
 0x155   :  { %891 = vmatpush1.bf16.msra.mxu0 %v1691_v44  ;;  %1532 = vmatpush3.bf16.msra.mxu1 %v1694_v45 }
 0x156   :  { %892 = vmatprep.subr.bf16.mxu0 %v1697_v1  ;;  %1533 = vmatprep.subr.bf16.mxu1 %v1865_v0 }
 0x159   :  { %893 = vmatpush1.bf16.msra.mxu0 %v1695_v47  ;;  %1534 = vmatpush3.bf16.msra.mxu1 %v1698_v48 }
 0x15a   :  { %894 = vmatprep.subr.bf16.mxu0 %v1701_v49  ;;  %1535 = vmatprep.subr.bf16.mxu1 %v1865_v0 }
 0x15d   :  { %895 = vmatpush1.bf16.msra.mxu0 %v1699_v51  ;;  %1536 = vmatpush3.bf16.msra.mxu1 %v1702_v52 }
 0x15e   :  { %896 = vmatprep.subr.bf16.mxu0 %v1705_v53  ;;  %1537 = vmatprep.subr.bf16.mxu1 %v1865_v0  ;;  %v1409_v53 = vld [vmem:[%s2039_s6] ss:$0 sm:$0xff] }
 0x161   :  { %897 = vmatpush1.bf16.msra.mxu0 %v1703_v55  ;;  %1538 = vmatpush3.bf16.msra.mxu1 %v1706_v56 }
 0x162   :  { %898 = vmatprep.subr.bf16.mxu0 %v1709_v57  ;;  %1539 = vmatprep.subr.bf16.mxu1 %v1865_v0 }
 0x165   :  { %899 = vmatpush1.bf16.msra.mxu0 %v1707_v59  ;;  %1540 = vmatpush3.bf16.msra.mxu1 %v1710_v60 }
 0x166   :  { %1545 = vmatprep.subr.bf16.mxu0 %v1865_v0  ;;  %1474 = vmatprep.subr.bf16.mxu1 %v1712_v63 }
 0x168   :  { %917 = vmatmul.mubr.bf16.vlgmr.msra.gmra.mrb[4].mxu0 %v345_v61  ;;  %1542 = vmatmul.mubr.bf16.vlgmr.msra.gmra.mrb[8].mxu1 %v345_v61 }
 0x169   :  { %1561 = vmatprep.mubr.msk.bf16.mxu0 %vm1867_vm0, %v1865_v0  ;;  %1546 = vmatpush3.bf16.msra.mxu0 %v1711_v62 }
 0x16a   :  { %1475 = vmatpush3.bf16.msra.mxu1 %v1713_v2  ;;  %1547 = vmatprep.subr.bf16.mxu0 %v1865_v0 }
 0x16b   :  { %1476 = vmatprep.subr.bf16.mxu1 %v1715_v3 }
 0x16d   :  { %1548 = vmatpush3.bf16.msra.mxu0 %v1714_v4 }
 0x16e   :  { %1477 = vmatpush3.bf16.msra.mxu1 %v1716_v5  ;;  %1549 = vmatprep.subr.bf16.mxu0 %v1865_v0 }
 0x16f   :  { %1478 = vmatprep.subr.bf16.mxu1 %v1718_v6 }
 0x171   :  { %1550 = vmatpush3.bf16.msra.mxu0 %v1717_v7 }
 0x172   :  { %1479 = vmatpush3.bf16.msra.mxu1 %v1719_v8  ;;  %1551 = vmatprep.subr.bf16.mxu0 %v1865_v0 }
 0x173   :  { %1480 = vmatprep.subr.bf16.mxu1 %v1721_v9 }
 0x175   :  { %1552 = vmatpush3.bf16.msra.mxu0 %v1720_v10 }
 0x176   :  { %1481 = vmatpush3.bf16.msra.mxu1 %v1722_v11  ;;  %1553 = vmatprep.subr.bf16.mxu0 %v1865_v0 }
 0x177   :  { %1482 = vmatprep.subr.bf16.mxu1 %v1724_v12 }
 0x179   :  { %1554 = vmatpush3.bf16.msra.mxu0 %v1723_v13 }
 0x17a   :  { %1483 = vmatpush3.bf16.msra.mxu1 %v1725_v14  ;;  %1555 = vmatprep.subr.bf16.mxu0 %v1865_v0 }
 0x17b   :  { %1484 = vmatprep.subr.bf16.mxu1 %v1727_v17 }
 0x17d   :  { %1556 = vmatpush3.bf16.msra.mxu0 %v1726_v19 }
 0x17e   :  { %1485 = vmatpush3.bf16.msra.mxu1 %v1728_v20  ;;  %1557 = vmatprep.subr.bf16.mxu0 %v1865_v0 }
 0x17f   :  { %1486 = vmatprep.subr.bf16.mxu1 %v1730_v22 }
 0x181   :  { %1558 = vmatpush3.bf16.msra.mxu0 %v1729_v21 }
 0x182   :  { %1559 = vmatprep.subr.bf16.mxu0 %v1865_v0  ;;  %1487 = vmatpush3.bf16.msra.mxu1 %v1731_v23  ;;  %v447_v0 = vrot.slane %v442_v32, %v118_v16 }
 0x183   :  { %1488 = vmatprep.subr.bf16.mxu1 %v1733_v25 }
 0x185   :  { %1560 = vmatpush3.bf16.msra.mxu0 %v1732_v24 }
 0x186   :  { %1489 = vmatpush3.bf16.msra.mxu1 %v1734_v26 }
 0x21b   :  { %v1459_v27 = vpop.f32.mrb[4].mxu1 }
 0x21c   :  { %v1460_v28 = vpop.f32.mrb[5].mxu1 }
 0x21d   :  { %v1461_v29 = vadd.f32 %v1460_v28, %v1459_v27  ;;  %v1462_v30 = vpop.f32.mrb[6].mxu1 }
 0x21e   :  { %v1463_v31 = vpop.f32.mrb[7].mxu1 }
 0x21f   :  { %v960_v35 = vadd.f32 %v1461_v29, %v455_v33 }
 0x23b   :  { %v918_v36 = vpop.f32.mrb[4].mxu0  ;;  %v999_v37 = vpop.f32.mrb[8].mxu1 }
 0x23c   :  { %v1565_v38 = vadd.f32 %v918_v36, %v447_v0  ;;  %v1000_v39 = vadd.f32 %v999_v37, %v960_v35  ;;  %v920_v40 = vpop.f32.mrb[5].mxu0  ;;  %v1543_v41 = vpop.f32.mrb[9].mxu1 }
 0x23d   :  { %v1566_v42 = vadd.f32 %v920_v40, %v451_v34  ;;  %v922_v43 = vpop.f32.mrb[6].mxu0  ;;  %v1002_v44 = vpop.f32.mrb[10].mxu1 }
 0x23e   :  { %v1005_v45 = vmax.f32 %v1565_v38, 0.0  ;;  %v1007_v1 = vmax.f32 %v1000_v39, 0.0  ;;  %v923_v47 = vpop.f32.mrb[7].mxu0  ;;  %v1544_v46 = vpop.f32.mrb[11].mxu1 }
 0x23f   :  { %v1006_v48 = vmax.f32 %v1566_v42, 0.0 }
 0x240   :  { %v1010_v49 = vpack.c.bf16 %v1007_v1, %v1007_v1  ;;  %v1008_v50 = vpack.c.bf16 %v1005_v45, %v1005_v45 }
 0x241   :  { %v1009_v16 = vpack.c.bf16 %v1006_v48, %v1006_v48 }
 0x242   :  { %1562 = vmatmul.mubr.bf16.vlgmr.msra.gmra.mrb[8].mxu0 %v1010_v49 }
 0x243   :  { %1242 = vmatprep.mubr.bf16.mxu1 %v1009_v16 }
 0x244   :  { %1243 = vmatmul.mubr.bf16.vlgmr.msra.gmra.mrb[12].mxu1 %v1008_v50 }
 0x315   :  { %v1284_v15 = vpop.f32.mrb[8].mxu0 }
 0x316   :  { %v1563_v18 = vpop.f32.mrb[9].mxu0 }
 0x317   :  { %v1490_v51 = vpop.f32.mrb[12].mxu1  ;;  %v1287_v52 = vpop.f32.mrb[10].mxu0 }
 0x318   :  { %v1491_v54 = vpop.f32.mrb[13].mxu1  ;;  %v1564_v55 = vpop.f32.mrb[11].mxu0 }
 0x319   :  { %v1492_v56 = vadd.f32 %v1491_v54, %v1490_v51  ;;  %v1493_v57 = vpop.f32.mrb[14].mxu1 }
 0x31a   :  { %v1494_v58 = vpop.f32.mrb[15].mxu1 }
 0x31b   :  { %v1245_v59 = vadd.f32 %v1492_v56, %v1409_v53 }
 0x31d   :  { %v1285_v60 = vadd.f32 %v1284_v15, %v1245_v59 }
 0x31f   :  { %v1290_v61 = vsub.f32 0.0, %v1285_v60 }
 0x321   :  { %v1291_v62 = vmul.f32 1.442695, %v1290_v61 }
 0x323   :  { %1735 = vpow2.f32 %v1291_v62 }
 0x32d   :  { %v1736_v63 = vpop.eup %1735 }
 0x32e   :  { %v1293_v2 = vadd.f32 1.0, %v1736_v63 }
 0x330   :  { %1737 = vrcp.f32 %v1293_v2 }
 0x33a   :  { %v1738_v3 = vpop.eup %1737 }
 0x33b   :  { %1295 = vst [vmem:[#allocation10] sm:$0xff] %v1738_v3 }
 0x33c   :  { %1838 = shalt.err (!%p1835_p8)
}
 0x33d   :  { %s1839_s10 = scalar_lea.hbm %s2040_s7, 128 }
 0x33e   :  { %p1840_p9 = scmp.ne.s32.totalorder %s2040_s7, %s1839_s10  ;;  %p1843_p10 = scmp.lt.u32.totalorder %s1839_s10, %s2040_s7 }
 0x340   :  { %p1845_p11 = pnand %p1843_p10, %p1840_p9 }
 0x342   :  { %1848 = shalt.err (!%p1845_p11)
}
 0x343   :  { %1305 = dma.vmem_to_hbm [thread:$0]  %s1303_s30, 128, %s2040_s7, [#allocation4]  }
 0x344   :  { %1855 = dma.done.wait [#allocation4], 128  }
 0x345   :  { %1856 = vsyncadd [#allocation4], 4294967168 }
 0x346   :  { %1309 = vsyncpa [#allocation3], 1 }
 0x347   :  { %1310 = vsyncpa [#allocation6], 1 }
 0x348   :  { %1311 = vsyncpa [#allocation9], 1 }
 0x349   :  { %1312 = vsyncpa [#allocation4], 1 }

</bundles_post_ra>
